<compile_context>
chip_gen: v5e
topology: v5e:2x2
jax: 0.10.0
libtpu: 0.0.40
codegen_flags: <defaults>
</compile_context>

<pallas_src>
import functools

import jax
import jax.numpy as jnp
from jax.experimental import pallas as pl
from jax.experimental.pallas import tpu as pltpu


def _cbow_kernel(x_ref, w1_ref, b1_ref, w2_ref, b2_ref, out_ref, acc_ref, *, max_pool):
    # Grid: (batch tiles ["parallel"], seq tiles ["arbitrary", innermost]).
    s = pl.program_id(1)
    ns = pl.num_programs(1)

    x = x_ref[...]                                        # (TS, TB, D), input dtype
    if max_pool:
        part = jnp.max(x, axis=0).astype(jnp.float32)     # max is exact in any dtype
    else:
        part = jnp.sum(x.astype(jnp.float32), axis=0)     # accumulate sums in f32

    @pl.when(s == 0)
    def _init():
        acc_ref[...] = part                               # avoids -inf/0 init logic

    @pl.when(s != 0)
    def _update():
        if max_pool:
            acc_ref[...] = jnp.maximum(acc_ref[...], part)
        else:
            acc_ref[...] = acc_ref[...] + part

    @pl.when(s == ns - 1)
    def _finalize():
        enc = acc_ref[...]                                # (TB, D) f32 encoding
        h = jnp.tanh(
            jnp.dot(enc, w1_ref[...], preferred_element_type=jnp.float32)
            + b1_ref[...]                                 # (1, H) broadcasts over TB
        )
        # H -> 1 layer: VPU multiply + lane reduction instead of an N=1 MXU pass.
        logits = jnp.sum(h * w2_ref[...], axis=-1, keepdims=True) + b2_ref[0, 0]
        out_ref[...] = jax.nn.sigmoid(logits).astype(out_ref.dtype)


def _pick_tile(dim, candidates):
    for c in candidates:
        if c <= dim and dim % c == 0:
            return c
    return dim  # fall back to the full (un-tiled) dimension


def _vmem_bytes(shape, itemsize):
    """Rough VMEM footprint of a buffer with (8, 128) layout padding."""
    shape = (1,) * max(0, 2 - len(shape)) + tuple(shape)
    lead = 1
    for d in shape[:-2]:
        lead *= d
    sub = -(-shape[-2] // 8) * 8
    lane = -(-shape[-1] // 128) * 128
    return lead * sub * lane * itemsize


def cbow_classifier(inputs, w1, b1, w2, b2, *, max_pool, block_b=None, block_s=None):
    """inputs: (S, B, D); w1: (D, H); b1: (1, H); w2: (H, 1); b2: (1, 1)."""
    S, B, D = inputs.shape
    H = w1.shape[1]

    # Batch tile: a multiple of 8 (sublane) dividing B, else the full batch.
    TB = block_b if block_b is not None else _pick_tile(B, (256, 128, 64, 32, 16, 8))
    # Sequence tile: keep the streamed x tile comfortably small so the
    # double-buffered pipeline fits even v7x's 64 MiB VMEM.
    if block_s is not None:
        TS = block_s
    else:
        per_seq_row = max(1, TB * D * inputs.dtype.itemsize)
        max_ts = max(1, (8 * 1024 * 1024) // per_seq_row)
        TS = _pick_tile(S, tuple(c for c in (128, 64, 32, 16, 8, 4, 2, 1) if c <= max_ts))
    assert B % TB == 0 and S % TS == 0, "tile sizes must divide (B, S)"

    w2_row = w2.reshape(1, H)  # (H, 1) -> (1, H): lets the kernel lane-reduce.

    isz = inputs.dtype.itemsize
    est = (
        2 * _vmem_bytes((TS, TB, D), isz)      # double-buffered x tiles
        + 2 * _vmem_bytes((D, H), 4)           # resident W1
        + 2 * _vmem_bytes((1, H), 4)           # b1
        + 2 * _vmem_bytes((1, H), 4)           # w2 row
        + 2 * _vmem_bytes((TB, 1), 4)          # output tile
        + _vmem_bytes((TB, D), 4)              # accumulator scratch
    )
    vmem_limit = int(min(40 * 1024 * 1024, max(8 * 1024 * 1024, est + 4 * 1024 * 1024)))

    kernel = functools.partial(_cbow_kernel, max_pool=max_pool)
    return pl.pallas_call(
        kernel,
        out_shape=jax.ShapeDtypeStruct((B, 1), jnp.float32),
        grid=(B // TB, S // TS),
        in_specs=[
            pl.BlockSpec((TS, TB, D), lambda b, s: (s, b, 0)),   # streamed input
            pl.BlockSpec((D, H), lambda b, s: (0, 0)),           # resident W1
            pl.BlockSpec((1, H), lambda b, s: (0, 0)),           # resident b1
            pl.BlockSpec((1, H), lambda b, s: (0, 0)),           # resident w2 row
            pl.BlockSpec(memory_space=pltpu.MemorySpace.SMEM),   # scalar b2
        ],
        out_specs=pl.BlockSpec((TB, 1), lambda b, s: (b, 0)),
        scratch_shapes=[pltpu.VMEM((TB, D), jnp.float32)],
        compiler_params=pltpu.CompilerParams(
            dimension_semantics=("parallel", "arbitrary"),
            vmem_limit_bytes=vmem_limit,
        ),
    )(inputs, w1, b1, w2_row, b2)


def _reference(inputs, w1, b1, w2, b2, *, max_pool):
    enc = jnp.max(inputs, axis=0) if max_pool else jnp.sum(inputs, axis=0)
    h = jnp.tanh(enc @ w1 + b1)
    # h2o (Linear(H, 1)) written as multiply + reduce: mathematically h @ w2 + b2.
    logits = jnp.sum(h * w2.reshape(1, -1), axis=-1, keepdims=True) + b2
    return jax.nn.sigmoid(logits)


if __name__ == "__main__":
    def _init_params(key, D, H):
        k_w1, k_b1, k_w2, k_b2 = jax.random.split(key, 4)
        bound1 = 1.0 / jnp.sqrt(D)
        w1 = jax.random.uniform(k_w1, (D, H), jnp.float32, -bound1, bound1)
        b1 = jax.random.uniform(k_b1, (1, H), jnp.float32, -bound1, bound1)
        bound2 = 1.0 / jnp.sqrt(H)
        w2 = jax.random.uniform(k_w2, (H, 1), jnp.float32, -bound2, bound2)
        b2 = jax.random.uniform(k_b2, (1, 1), jnp.float32, -bound2, bound2)
        return w1, b1, w2, b2

    key = jax.random.PRNGKey(0)
    ok = True

    # (S, B, D, H, block_b, block_s).  The second case forces a multi-step grid
    # (2 batch tiles x 4 sequence tiles) to exercise the accumulator/pipeline.
    cases = [
        (8, 4, 16, 32, None, None),
        (32, 16, 128, 64, 8, 8),
    ]
    for (S, B, D, H, tb, ts) in cases:
        key, k_x, k_p = jax.random.split(key, 3)
        inputs = jax.random.normal(k_x, (S, B, D), dtype=jnp.float32)
        w1, b1, w2, b2 = _init_params(k_p, D, H)
        for max_pool in (True, False):
            out = cbow_classifier(
                inputs, w1, b1, w2, b2, max_pool=max_pool, block_b=tb, block_s=ts
            )
            out = jax.block_until_ready(out)
            ref = _reference(inputs, w1, b1, w2, b2, max_pool=max_pool)
            if out.shape != (B, 1) or not jnp.allclose(out, ref, atol=1e-5, rtol=1e-5):
                ok = False

    if ok:
        print("KERNEL_OK")
</pallas_src>

<mosaic_0001>
module attributes {stable_mosaic.version = 11 : i64} {
  func.func @_cbow_kernel(%arg0: i32, %arg1: i32, %arg2: memref<8x4x16xf32, #tpu.memory_space<vmem>>, %arg3: memref<16x32xf32, #tpu.memory_space<vmem>>, %arg4: memref<1x32xf32, #tpu.memory_space<vmem>>, %arg5: memref<1x32xf32, #tpu.memory_space<vmem>>, %arg6: memref<1x1xf32, #tpu.memory_space<smem>>, %arg7: memref<4x1xf32, #tpu.memory_space<vmem>>, %arg8: memref<4x16xf32, #tpu.memory_space<vmem>>) attributes {dimension_semantics = [#tpu.dimension_semantics<parallel>, #tpu.dimension_semantics<arbitrary>], iteration_bounds = array<i64: 1, 1>, scalar_prefetch = 0 : i64, scratch_operands = 1 : i64, tpu.core_type = #tpu.core_type<tc>, window_params = [{transform_indices = @transform_0, window_bounds = array<i64: 8, 4, 16>}, {pipeline_mode = #tpu.pipeline_mode<synchronous>, transform_indices = @transform_1, window_bounds = array<i64: 16, 32>}, {pipeline_mode = #tpu.pipeline_mode<synchronous>, transform_indices = @transform_2, window_bounds = array<i64: 1, 32>}, {pipeline_mode = #tpu.pipeline_mode<synchronous>, transform_indices = @transform_3, window_bounds = array<i64: 1, 32>}, {transform_indices = @transform_4, window_bounds = array<i64: 1, 1>}, {transform_indices = @transform_5, window_bounds = array<i64: 4, 1>}]} {
    %c0 = arith.constant 0 : index
    %c0_0 = arith.constant 0 : index
    %c0_1 = arith.constant 0 : index
    %0 = vector.load %arg2[%c0, %c0_0, %c0_1] : memref<8x4x16xf32, #tpu.memory_space<vmem>>, vector<8x4x16xf32>
    %cst = arith.constant dense<0xFF800000> : vector<4x16xf32>
    %1 = vector.multi_reduction <maximumf>, %0, %cst [0] : vector<8x4x16xf32> to vector<4x16xf32>
    %c0_i32 = arith.constant 0 : i32
    %2 = arith.cmpi eq, %arg1, %c0_i32 : i32
    %3 = arith.extui %2 : i1 to i32
    %c0_i32_2 = arith.constant 0 : i32
    %4 = arith.cmpi ne, %3, %c0_i32_2 : i32
    scf.if %4 {
      %c0_7 = arith.constant 0 : index
      %c0_8 = arith.constant 0 : index
      %11 = vector.load %arg8[%c0_7, %c0_8] : memref<4x16xf32, #tpu.memory_space<vmem>>, vector<4x16xf32>
      tpu.vector_store %arg8[%c0_7, %c0_8], %1 {strides = array<i32>} : memref<4x16xf32, #tpu.memory_space<vmem>>, vector<4x16xf32>,
    } else {
    }
    %c0_i32_3 = arith.constant 0 : i32
    %5 = arith.cmpi ne, %arg1, %c0_i32_3 : i32
    %6 = arith.extui %5 : i1 to i32
    %c0_i32_4 = arith.constant 0 : i32
    %7 = arith.cmpi ne, %6, %c0_i32_4 : i32
    scf.if %7 {
      %c0_7 = arith.constant 0 : index
      %c0_8 = arith.constant 0 : index
      %11 = vector.load %arg8[%c0_7, %c0_8] : memref<4x16xf32, #tpu.memory_space<vmem>>, vector<4x16xf32>
      %12 = arith.maximumf %11, %1 : vector<4x16xf32>
      %c0_9 = arith.constant 0 : index
      %c0_10 = arith.constant 0 : index
      %13 = vector.load %arg8[%c0_9, %c0_10] : memref<4x16xf32, #tpu.memory_space<vmem>>, vector<4x16xf32>
      tpu.vector_store %arg8[%c0_9, %c0_10], %12 {strides = array<i32>} : memref<4x16xf32, #tpu.memory_space<vmem>>, vector<4x16xf32>,
    } else {
    }
    %c0_i32_5 = arith.constant 0 : i32
    %8 = arith.cmpi eq, %arg1, %c0_i32_5 : i32
    %9 = arith.extui %8 : i1 to i32
    %c0_i32_6 = arith.constant 0 : i32
    %10 = arith.cmpi ne, %9, %c0_i32_6 : i32
    scf.if %10 {
      %c0_7 = arith.constant 0 : index
      %c0_8 = arith.constant 0 : index
      %11 = vector.load %arg8[%c0_7, %c0_8] : memref<4x16xf32, #tpu.memory_space<vmem>>, vector<4x16xf32>
      %c0_9 = arith.constant 0 : index
      %c0_10 = arith.constant 0 : index
      %12 = vector.load %arg3[%c0_9, %c0_10] : memref<16x32xf32, #tpu.memory_space<vmem>>, vector<16x32xf32>
      %cst_11 = arith.constant dense<0.000000e+00> : vector<4x32xf32>
      %13 = tpu.matmul %11, %12, %cst_11 {dimension_numbers = #tpu.dot_dimension_numbers<[1], [0], [0], [1], [0, 0, 1, 1], [], []>} : vector<4x16xf32>, vector<16x32xf32>, vector<4x32xf32> -> vector<4x32xf32>
      %c0_12 = arith.constant 0 : index
      %c0_13 = arith.constant 0 : index
      %14 = vector.load %arg4[%c0_12, %c0_13] : memref<1x32xf32, #tpu.memory_space<vmem>>, vector<1x32xf32>
      %15 = vector.broadcast %14 : vector<1x32xf32> to vector<4x32xf32>
      %16 = arith.addf %13, %15 : vector<4x32xf32>
      %17 = math.tanh %16 : vector<4x32xf32>
      %c0_14 = arith.constant 0 : index
      %c0_15 = arith.constant 0 : index
      %18 = vector.load %arg5[%c0_14, %c0_15] : memref<1x32xf32, #tpu.memory_space<vmem>>, vector<1x32xf32>
      %19 = vector.broadcast %18 : vector<1x32xf32> to vector<4x32xf32>
      %20 = arith.mulf %17, %19 : vector<4x32xf32>
      %cst_16 = arith.constant dense<0.000000e+00> : vector<4xf32>
      %21 = vector.multi_reduction <add>, %20, %cst_16 [1] : vector<4x32xf32> to vector<4xf32>
      %22 = vector.shape_cast %21 : vector<4xf32> to vector<4x1xf32>
      %c0_17 = arith.constant 0 : index
      %c0_18 = arith.constant 0 : index
      %23 = memref.load %arg6[%c0_17, %c0_18] : memref<1x1xf32, #tpu.memory_space<smem>>
      %24 = vector.broadcast %23 : f32 to vector<4x1xf32>
      %25 = arith.addf %22, %24 : vector<4x1xf32>
      %26 = arith.negf %25 : vector<4x1xf32>
      %27 = math.exp %26 : vector<4x1xf32>
      %cst_19 = arith.constant 1.000000e+00 : f32
      %28 = vector.broadcast %cst_19 : f32 to vector<4x1xf32>
      %29 = arith.addf %28, %27 : vector<4x1xf32>
      %30 = arith.divf %28, %29 : vector<4x1xf32>
      %c0_20 = arith.constant 0 : index
      %c0_21 = arith.constant 0 : index
      %31 = vector.load %arg7[%c0_20, %c0_21] : memref<4x1xf32, #tpu.memory_space<vmem>>, vector<4x1xf32>
      tpu.vector_store %arg7[%c0_20, %c0_21], %30 {strides = array<i32>} : memref<4x1xf32, #tpu.memory_space<vmem>>, vector<4x1xf32>,
    } else {
    }
    return
  }
  func.func @transform_0(%arg0: i32, %arg1: i32) -> (i32, i32, i32) {
    %c0_i32 = arith.constant 0 : i32
    %c0_i32_0 = arith.constant 0 : i32
    return %arg1, %arg0, %c0_i32 : i32, i32, i32
  }
  func.func @transform_1(%arg0: i32, %arg1: i32) -> (i32, i32) {
    %c0_i32 = arith.constant 0 : i32
    %c0_i32_0 = arith.constant 0 : i32
    %c0_i32_1 = arith.constant 0 : i32
    return %c0_i32, %c0_i32_0 : i32, i32
  }
  func.func @transform_2(%arg0: i32, %arg1: i32) -> (i32, i32) {
    %c0_i32 = arith.constant 0 : i32
    %c0_i32_0 = arith.constant 0 : i32
    %c0_i32_1 = arith.constant 0 : i32
    return %c0_i32, %c0_i32_0 : i32, i32
  }
  func.func @transform_3(%arg0: i32, %arg1: i32) -> (i32, i32) {
    %c0_i32 = arith.constant 0 : i32
    %c0_i32_0 = arith.constant 0 : i32
    %c0_i32_1 = arith.constant 0 : i32
    return %c0_i32, %c0_i32_0 : i32, i32
  }
  func.func @transform_4(%arg0: i32, %arg1: i32) -> (i32, i32) {
    %c0_i32 = arith.constant 0 : i32
    %c0_i32_0 = arith.constant 0 : i32
    %c0_i32_1 = arith.constant 0 : i32
    return %c0_i32, %c0_i32_0 : i32, i32
  }
  func.func @transform_5(%arg0: i32, %arg1: i32) -> (i32, i32) {
    %c0_i32 = arith.constant 0 : i32
    %c0_i32_0 = arith.constant 0 : i32
    return %arg0, %c0_i32 : i32, i32
  }
}

</mosaic_0001>

<bundles_post_ra>
// kernel: tpu_custom_call.1
= control target key start
LH: loop header
LB: loop body
LE: loop exit
PB: predicated region body
PF: predicated region fallthrough
CT: control target
= control target key end

     0   :  { %11 = vsyncpa [#allocation5], 0  ;;  %s294_s0 = inlined_call_operand.hbm [shape: f32[8,4,16], index: 0, kind: input, shape index: {}]   ;;  %s295_s1 = inlined_call_operand.hbm [shape: f32[16,32], index: 1, kind: input, shape index: {}]   ;;  %s296_s2 = inlined_call_operand.vmem [shape: f32[1,32], index: 2, kind: input, shape index: {}]   ;;  %s297_s3 = inlined_call_operand.vmem [shape: f32[1,32], index: 3, kind: input, shape index: {}]   ;;  %s298_s4 = inlined_call_operand.<no memory space> [shape: f32[1,1], index: 4, kind: input, shape index: {}]   ;;  %s299_s5 = inlined_call_operand.vmem [shape: f32[4,1], index: 5, kind: output, shape index: {}]  }
   0x1   :  { %s17_s20 = sshll.u32 %s294_s0, 4  ;;  %s18_s20 = int_to_ptr.hbm [resolvable:$true] %s17_s20 }
   0x2   :  { %12 = vsyncpa [#allocation7], 0  ;;  %s231_s21 = smov [#allocation4]   ;;  %s30_s25 = sshll.u32 %s295_s1, 4  ;;  %s31_s25 = int_to_ptr.hbm [resolvable:$true] %s30_s25 }
   0x3   :  { %s19_s22 = sshll.u32 %s231_s21, 4  ;;  %s232_s26 = smov 64   ;;  %s20_s22 = int_to_ptr.vmem [resolvable:$true] %s19_s22 }
   0x4   :  { %s233_s27 = smov 4   ;;  %s234_s28 = smov [#allocation6]  }
   0x5   :  { %25 = dma.hbm_to_vmem [thread:$0]  %s18_s20, 512, %s20_s22, [#allocation5], %s232_s26, %s232_s26, %s233_s27  }
   0x6   :  { %s32_s29 = sshll.u32 %s234_s28, 4  ;;  %s235_s30 = smov 128   ;;  %s33_s29 = int_to_ptr.vmem [resolvable:$true] %s32_s29 }
   0x7   :  { %s236_s6 = smov 8  }
   0x8   :  { %38 = dma.hbm_to_vmem [thread:$0]  %s31_s25, 256, %s33_s29, [#allocation7], %s235_s30, %s235_s30, %s236_s6  }
   0x9   :  { %227 = dma.done.wait [#allocation5], 512  }
   0xa   :  { %228 = vsyncadd [#allocation5], 4294966784 }
   0xb   :  { %229 = dma.done.wait [#allocation7], 256  }
   0xc   :  { %230 = vsyncadd [#allocation7], 4294967040  ;;  %v94_v0 = vld [vmem:[#allocation6 + $0x8] sm:$0xff]  ;;  %v93_v1 = vld [vmem:[#allocation6] sm:$0xff]  ;;  %vm61_vm0 = vcmask 125952   ;;  %vm99_vm1 = vcmask 130048   ;;  %v134_v33 = vstv %s298_s4 }
   0xd   :  { %v53_v2 = vld [vmem:[#allocation4] sm:$0xf]  ;;  %117 = vmatpush.msra.mxu0 %v94_v0  ;;  %v54_v3 = vld [vmem:[#allocation4 + $0x4] sm:$0xf]  ;;  %v55_v4 = vld [vmem:[#allocation4 + $0x8] sm:$0xf] }
   0xe   :  { %v56_v5 = vld [vmem:[#allocation4 + $0xc] sm:$0xf]  ;;  %v57_v6 = vld [vmem:[#allocation4 + $0x10] sm:$0xf]  ;;  %v58_v7 = vld [vmem:[#allocation4 + $0x14] sm:$0xf] }
   0xf   :  { %v59_v8 = vld [vmem:[#allocation4 + $0x18] sm:$0xf]  ;;  %118 = vmatpush.msra.mxu0 %v93_v1  ;;  %v60_v9 = vld [vmem:[#allocation4 + $0x1c] sm:$0xf]  ;;  %v62_v10 = vsel %vm61_vm0, %v53_v2, -inf  ;;  %v63_v11 = vsel %vm61_vm0, %v54_v3, -inf }
  0x10   :  { %v64_v12 = vsel %vm61_vm0, %v55_v4, -inf  ;;  %v65_v13 = vsel %vm61_vm0, %v56_v5, -inf  ;;  %v66_v14 = vsel %vm61_vm0, %v57_v6, -inf  ;;  %v68_v15 = vsel %vm61_vm0, %v58_v7, -inf  ;;  %v171_v26 = vld [vmem:[%s296_s2] ss:$0 sm:$0xff] }
  0x11   :  { %v70_v16 = vsel %vm61_vm0, %v59_v8, -inf  ;;  %v72_v17 = vsel %vm61_vm0, %v60_v9, -inf  ;;  %v67_v18 = vmax.f32 %v62_v10, %v66_v14  ;;  %v69_v19 = vmax.f32 %v63_v11, %v68_v15  ;;  %v172_v29 = vld [vmem:[%s297_s3] ss:$0 sm:$0xff] }
  0x12   :  { %v71_v20 = vmax.f32 %v64_v12, %v70_v16  ;;  %v73_v21 = vmax.f32 %v65_v13, %v72_v17  ;;  %vm129_vm2 = vcmask 257024   ;;  %vm155_vm6 = vcmask 3072  }
  0x13   :  { %v74_v22 = vmax.f32 %v67_v18, %v69_v19 }
  0x14   :  { %v75_v23 = vmax.f32 %v71_v20, %v73_v21 }
  0x16   :  { %v76_v24 = vmax.f32 %v74_v22, %v75_v23 }
  0x18   :  { %81 = vst.msk [vmem:[#allocation2] sm:$0xf] %vm61_vm0, %v76_v24 }
  0x1f   :  { %v92_v25 = vld [vmem:[#allocation2] sm:$0xf] }
  0x20   :  { %163 = vmatmul.msk.f32.vlgmr.msra.gmra.mxu0 %vm99_vm1, %v92_v25 }
  0x9d   :  { %v120_v27 = vpop.f32.mrf.mxu0 }
  0x9e   :  { %v121_v28 = vadd.f32 %v171_v26, %v120_v27 }
  0xa0   :  { %173 = vtanh.f32 %v121_v28 }
  0xa6   :  { %v174_v30 = vpop.eup %173 }
  0xa7   :  { %v128_v31 = vmul.f32 %v174_v30, %v172_v29 }
  0xa9   :  { %v130_v32 = vsel %vm129_vm2, %v128_v31, 0.0 }
  0xaa   :  { %131 = vadd.xlane.f32.xlu0 %v130_v32 }
 0x11d   :  { %v132_v34 = vpop.xlane.xlu0 %131 }
 0x11e   :  { %v135_v35 = vadd.f32 %v134_v33, %v132_v34 }
 0x120   :  { %v164_v36 = vmul.f32 -1.442695, %v135_v35 }
 0x122   :  { %175 = vpow2.f32 %v164_v36 }
 0x128   :  { %v176_v37 = vpop.eup %175 }
 0x129   :  { %v139_v38 = vadd.f32 1.0, %v176_v37 }
 0x12b   :  { %177 = vrcp.f32 %v139_v38  ;;  %v151_v42 = vand.u32 2147483648, %v139_v38  ;;  %v149_v44 = vand.u32 2147483647, %v139_v38  ;;  %vm145_vm4 = vweird.f32 %v139_v38 }
 0x12d   :  { %v152_v46 = vor.u32 1.1754944e-38, %v151_v42  ;;  %vm150_vm7 = vcmp.eq.f32.partialorder %v149_v44, 8.507059e+37 }
 0x131   :  { %v178_v39 = vpop.eup %177 }
 0x132   :  { %v141_v40 = vmul.f32 %v178_v39, %v139_v38  ;;  %vm146_vm3 = vweird.f32 %v178_v39 }
 0x133   :  { %vm147_vm5 = vmor %vm145_vm4, %vm146_vm3 }
 0x134   :  { %v142_v41 = vsub.f32 1.0, %v141_v40 }
 0x136   :  { %v143_v43 = vmul.f32 %v178_v39, %v142_v41 }
 0x138   :  { %v144_v45 = vadd.f32 %v178_v39, %v143_v43 }
 0x13a   :  { %v148_v47 = vsel %vm147_vm5, %v178_v39, %v144_v45 }
 0x13b   :  { %v153_v48 = vsel %vm150_vm7, %v152_v46, %v148_v47 }
 0x13c   :  { %156 = vst.msk [vmem:[%s299_s5] sm:$0xf] %vm155_vm6, %v153_v48 }
 0x13d   :  { %161 = vsyncpa [#allocation5], 1 }
 0x13e   :  { %162 = vsyncpa [#allocation7], 1 }

</bundles_post_ra>
